<compile_context>
chip_gen: v6e
topology: v6e:2x2x1
jax: 0.10.0
libtpu: 0.0.40
codegen_flags: <defaults>
</compile_context>

<pallas_src>
import functools

import jax
import jax.numpy as jnp
from jax.experimental import pallas as pl
from jax.experimental.pallas import tpu as pltpu


def _att_kernel(x_ref, theta_hbm_ref, out_ref,
                acc_ref, common_ref, theta_vmem_ref, theta_sem, *,
                n_rows, tile_n):
    sweep = pl.program_id(0)            # 0: mean/common pass, 1: gated-sum pass
    t = pl.program_id(1)                # row-tile index
    n_tiles = pl.num_programs(1)
    d = x_ref.shape[1]

    # One-shot theta DMA (HBM -> single VMEM scratch buffer).  Constructing the
    # descriptor emits nothing; start/wait are gated below.
    theta_cp = pltpu.make_async_copy(theta_hbm_ref, theta_vmem_ref,
                                     theta_sem.at[0])

    # Kick the theta copy at the very first grid step so it overlaps the whole
    # sweep-0 stream of x tiles.
    @pl.when(jnp.logical_and(sweep == 0, t == 0))
    def _():
        theta_cp.start()

    # (Re)initialize the partial-sum accumulator at the start of each sweep.
    @pl.when(t == 0)
    def _():
        acc_ref[...] = jnp.zeros_like(acc_ref)

    x = x_ref[...]                      # (tile_n, D) f32

    # Mask rows past N (emitted only when the tile does not divide N).  Narrow
    # (tile_n, 1) predicate; jnp.where broadcasts it across lanes.  Keep the
    # select (not multiply) so undefined padded rows never propagate NaN/Inf.
    if n_rows % tile_n != 0:
        row = jax.lax.broadcasted_iota(jnp.int32, (tile_n, 1), 0) + t * tile_n
        x = jnp.where(row < n_rows, x, 0.0)

    inv_n = jnp.float32(1.0 / n_rows)

    def partial_sum(v):
        # Reduce a (tile_n, D) tile into the accumulator shape without a
        # per-tile cross-sublane reduction when tile_n is a multiple of 8.
        if tile_n % 8 == 0:
            return v.reshape(tile_n // 8, 8, d).sum(axis=0)    # (8, D), VPU only
        return jnp.sum(v, axis=0, keepdims=True)               # (1, D) fallback

    # ---- Sweep 0: accumulate sum(x) over rows. ----
    @pl.when(sweep == 0)
    def _():
        acc_ref[...] += partial_sum(x)

    # End of sweep 0: mean -> common = relu(theta @ mean); one-shot matvec.
    @pl.when(jnp.logical_and(sweep == 0, t == n_tiles - 1))
    def _():
        theta_cp.wait()
        mean_row = jnp.sum(acc_ref[...], axis=0, keepdims=True) * inv_n  # (1, D)
        # common[j] = sum_k theta[j, k] * mean[k]  (trans-B contraction).
        common = jax.lax.dot_general(
            mean_row, theta_vmem_ref[...],
            dimension_numbers=(((1,), (1,)), ((), ())),
            preferred_element_type=jnp.float32)                          # (1, D)
        common_ref[...] = jnp.maximum(common, 0.0)

    # ---- Sweep 1: accumulate sum(x * sigmoid(x @ common)) over rows. ----
    @pl.when(sweep == 1)
    def _():
        common = common_ref[...]                                   # (1, D)
        # (tile_n, D) x (1, D)^T -> (tile_n, 1) on the MXU (idle in this sweep).
        logits = jax.lax.dot_general(
            x, common,
            dimension_numbers=(((1,), (1,)), ((), ())),
            preferred_element_type=jnp.float32)
        gate = jax.nn.sigmoid(logits)                              # (tile_n, 1)
        acc_ref[...] += partial_sum(x * gate)

    # End of sweep 1: write the mean of the gated rows.
    @pl.when(jnp.logical_and(sweep == 1, t == n_tiles - 1))
    def _():
        total = jnp.sum(acc_ref[...], axis=0, keepdims=True)       # (1, D)
        out_ref[...] = (total * inv_n).astype(out_ref.dtype)


def att_layer_forward(embed_vec, theta, *, tile_n=None):
    """embed_vec: (N, D) f32, theta: (D, D) f32  ->  (D,) f32."""
    n_rows, d = embed_vec.shape
    assert theta.shape == (d, d)
    embed_vec = embed_vec.astype(jnp.float32)
    theta = theta.astype(jnp.float32)

    # ---- Per-generation VMEM budget -------------------------------------
    try:
        vmem_cap = int(pltpu.get_tpu_info().vmem_capacity_bytes)
    except Exception:
        vmem_cap = 64 << 20                       # conservative (v7x physical)

    # Scoped limit ~ 3/4 of physical VMEM: 96 MiB on v5e/v6e, 48 MiB on v7x.
    vmem_limit = int(min(vmem_cap * 3 // 4, 100 << 20))

    # VMEM not available for x tiles: theta scratch (single-buffered), the
    # small accumulators/common/out blocks, Mosaic internal scratch headroom.
    reserve = (d * d + 64 * d) * 4 + (2 << 20)
    x_budget = max(vmem_limit - reserve, 1 << 20)

    x_bytes = n_rows * d * 4

    if tile_n is None:
        if 2 * x_bytes <= x_budget:
            # Resident fast path: one row tile covering all of embed_vec.  The
            # x block index is then constant over the whole grid, so it is
            # DMA'd once and reused by sweep 1 (half the HBM traffic).
            tile_n = n_rows
        else:
            # Streaming path: size tiles by BYTES per buffer, not rows.
            # ~4 MiB on small-VMEM parts (v7x), ~8 MiB on 128 MiB parts.
            per_buf = (4 << 20) if vmem_cap <= (64 << 20) else (8 << 20)
            per_buf = min(per_buf, x_budget // 2)     # double-buffered x slab
            tile_n = max(8, per_buf // (d * 4))
    if tile_n >= n_rows:
        tile_n = n_rows                      # single tile: block dim == array dim
    else:
        tile_n = max(8, (tile_n // 8) * 8)   # partial tiles: sublane multiple of 8

    n_tiles = pl.cdiv(n_rows, tile_n)
    acc_rows = 8 if tile_n % 8 == 0 else 1

    cost = pl.CostEstimate(
        flops=int(5 * n_rows * d + 2 * d * d),
        transcendentals=int(n_rows),
        bytes_accessed=int(2 * n_rows * d * 4 + d * d * 4 + d * 4),
    )

    kernel = functools.partial(_att_kernel, n_rows=n_rows, tile_n=tile_n)

    out = pl.pallas_call(
        kernel,
        out_shape=jax.ShapeDtypeStruct((1, d), jnp.float32),
        grid=(2, n_tiles),                            # (sweep, row-tile)
        in_specs=[
            # Row tiles of embed_vec; constant block index when resident.
            pl.BlockSpec((tile_n, d), lambda s, t: (t, 0)),
            # theta stays in HBM (no double-buffered BlockSpec slab); the
            # kernel DMAs it once into a single VMEM scratch buffer.
            pl.BlockSpec(memory_space=pl.ANY),
        ],
        out_specs=pl.BlockSpec((1, d), lambda s, t: (0, 0)),
        scratch_shapes=[
            pltpu.VMEM((acc_rows, d), jnp.float32),   # partial-sum accumulator
            pltpu.VMEM((1, d), jnp.float32),          # common = relu(theta @ mean)
            pltpu.VMEM((d, d), jnp.float32),          # theta, single-buffered
            pltpu.SemaphoreType.DMA((1,)),            # theta DMA completion sem
        ],
        compiler_params=pltpu.CompilerParams(
            dimension_semantics=("arbitrary", "arbitrary"),
            vmem_limit_bytes=vmem_limit,
        ),
        cost_estimate=cost,
    )(embed_vec, theta)
    return out[0]


def att_layer_reference(embed_vec, theta):
    mean_unit = jnp.mean(embed_vec, axis=0)
    common = jnp.maximum(theta @ mean_unit, 0.0)
    gate = jax.nn.sigmoid(embed_vec @ common)
    return jnp.mean(embed_vec * gate[:, None], axis=0)


if __name__ == "__main__":
    # Small shapes consistent with the module: N "units" x unit_dim features.
    # N is deliberately not a multiple of the forced row tile so the forced
    # path runs multiple tiles per sweep and exercises the masked last tile.
    N = 20
    UNIT_DIM = 32

    key = jax.random.PRNGKey(0)
    k_x, k_theta = jax.random.split(key)

    embed_vec = jax.random.uniform(k_x, (N, UNIT_DIM), dtype=jnp.float32)

    # theta ~ kaiming_normal_(mode='fan_out', nonlinearity='relu'):
    # for a square (D, D) weight, fan_out = D, std = sqrt(2 / D).
    std = (2.0 / UNIT_DIM) ** 0.5
    theta = std * jax.random.normal(
        k_theta, (UNIT_DIM, UNIT_DIM), dtype=jnp.float32)

    ref = att_layer_reference(embed_vec, theta)

    # Streaming path: grid = (2 sweeps, 3 row tiles), masked last tile,
    # (8, D) partial-sum accumulator, theta DMA overlapped with sweep 0.
    new_embed = att_layer_forward(embed_vec, theta, tile_n=8)
    new_embed = jax.block_until_ready(new_embed)
    assert new_embed.shape == (UNIT_DIM,)
    assert jnp.allclose(new_embed, ref, atol=1e-5, rtol=1e-5), (
        "Pallas output mismatch vs. JAX reference (streaming path)")

    # Auto path: resident single tile, x fetched from HBM once for both sweeps.
    new_embed_auto = jax.block_until_ready(att_layer_forward(embed_vec, theta))
    assert jnp.allclose(new_embed_auto, ref, atol=1e-5, rtol=1e-5), (
        "Pallas output mismatch vs. JAX reference (resident path)")

    print("KERNEL_OK")
</pallas_src>

<mosaic_0001>
module attributes {stable_mosaic.version = 11 : i64} {
  func.func @_att_kernel(%arg0: i32, %arg1: i32, %arg2: memref<8x32xf32, #tpu.memory_space<vmem>>, %arg3: memref<32x32xf32, #tpu.memory_space<any>>, %arg4: memref<1x32xf32, #tpu.memory_space<vmem>>, %arg5: memref<8x32xf32, #tpu.memory_space<vmem>>, %arg6: memref<1x32xf32, #tpu.memory_space<vmem>>, %arg7: memref<32x32xf32, #tpu.memory_space<vmem>>, %arg8: memref<1x!tpu.dma_semaphore, #tpu.memory_space<semaphore_mem>>) attributes {dimension_semantics = [#tpu.dimension_semantics<arbitrary>, #tpu.dimension_semantics<arbitrary>], iteration_bounds = array<i64: 2, 3>, scalar_prefetch = 0 : i64, scratch_operands = 4 : i64, tpu.core_type = #tpu.core_type<tc>, window_params = [{transform_indices = @transform_0, window_bounds = array<i64: 8, 32>}, {}, {pipeline_mode = #tpu.pipeline_mode<synchronous>, transform_indices = @transform_2, window_bounds = array<i64: 1, 32>}]} {
    %c0_i32 = arith.constant 0 : i32
    %0 = arith.cmpi eq, %arg0, %c0_i32 : i32
    %c0_i32_0 = arith.constant 0 : i32
    %1 = arith.cmpi eq, %arg1, %c0_i32_0 : i32
    %2 = arith.andi %0, %1 : i1
    %3 = arith.extui %2 : i1 to i32
    %c0_i32_1 = arith.constant 0 : i32
    %c0_i32_2 = arith.constant 0 : i32
    %4 = arith.cmpi ne, %3, %c0_i32_2 : i32
    scf.if %4 {
      %35 = tpu.memref_slice %arg8[%c0_i32_1] : memref<1x!tpu.dma_semaphore, #tpu.memory_space<semaphore_mem>> -> memref<1x!tpu.dma_semaphore, #tpu.memory_space<semaphore_mem>>
      %36 = tpu.memref_squeeze %35 : memref<1x!tpu.dma_semaphore, #tpu.memory_space<semaphore_mem>> -> memref<!tpu.dma_semaphore, #tpu.memory_space<semaphore_mem>>
      tpu.enqueue_dma source(%arg3 : memref<32x32xf32, #tpu.memory_space<any>>) target(%arg7 : memref<32x32xf32, #tpu.memory_space<vmem>>) target_semaphore(%36 : memref<!tpu.dma_semaphore, #tpu.memory_space<semaphore_mem>>)
    } else {
    }
    %c0_i32_3 = arith.constant 0 : i32
    %5 = arith.cmpi eq, %arg1, %c0_i32_3 : i32
    %6 = arith.extui %5 : i1 to i32
    %c0_i32_4 = arith.constant 0 : i32
    %7 = arith.cmpi ne, %6, %c0_i32_4 : i32
    scf.if %7 {
      %cst_17 = arith.constant 0.000000e+00 : f32
      %35 = vector.broadcast %cst_17 : f32 to vector<8x32xf32>
      %c0_18 = arith.constant 0 : index
      %c0_19 = arith.constant 0 : index
      %36 = vector.load %arg5[%c0_18, %c0_19] : memref<8x32xf32, #tpu.memory_space<vmem>>, vector<8x32xf32>
      tpu.vector_store %arg5[%c0_18, %c0_19], %35 {strides = array<i32>} : memref<8x32xf32, #tpu.memory_space<vmem>>, vector<8x32xf32>,
    } else {
    }
    %c0 = arith.constant 0 : index
    %c0_5 = arith.constant 0 : index
    %8 = vector.load %arg2[%c0, %c0_5] : memref<8x32xf32, #tpu.memory_space<vmem>>, vector<8x32xf32>
    %9 = tpu.iota {dimensions = array<i32: 0>} : vector<8x1xi32>
    %c8_i32 = arith.constant 8 : i32
    %10 = arith.muli %arg1, %c8_i32 : i32
    %11 = vector.broadcast %10 : i32 to vector<8x1xi32>
    %12 = arith.addi %9, %11 : vector<8x1xi32>
    %c20_i32 = arith.constant 20 : i32
    %13 = vector.broadcast %c20_i32 : i32 to vector<8x1xi32>
    %14 = arith.cmpi slt, %12, %13 : vector<8x1xi32>
    %cst = arith.constant 0.000000e+00 : f32
    %15 = vector.shape_cast %14 : vector<8x1xi1> to vector<8x1xi1>
    %16 = vector.broadcast %15 : vector<8x1xi1> to vector<8x32xi1>
    %17 = vector.broadcast %cst : f32 to vector<8x32xf32>
    %18 = arith.select %16, %8, %17 : vector<8x32xi1>, vector<8x32xf32>
    %c0_i32_6 = arith.constant 0 : i32
    %19 = arith.cmpi eq, %arg0, %c0_i32_6 : i32
    %20 = arith.extui %19 : i1 to i32
    %c0_i32_7 = arith.constant 0 : i32
    %21 = arith.cmpi ne, %20, %c0_i32_7 : i32
    scf.if %21 {
      %c0_17 = arith.constant 0 : index
      %c0_18 = arith.constant 0 : index
      %35 = vector.load %arg5[%c0_17, %c0_18] : memref<8x32xf32, #tpu.memory_space<vmem>>, vector<8x32xf32>
      %36 = vector.shape_cast %18 : vector<8x32xf32> to vector<1x8x32xf32>
      %cst_19 = arith.constant dense<0.000000e+00> : vector<8x32xf32>
      %37 = vector.multi_reduction <add>, %36, %cst_19 [0] : vector<1x8x32xf32> to vector<8x32xf32>
      %38 = arith.addf %35, %37 : vector<8x32xf32>
      %c0_20 = arith.constant 0 : index
      %c0_21 = arith.constant 0 : index
      %39 = vector.load %arg5[%c0_20, %c0_21] : memref<8x32xf32, #tpu.memory_space<vmem>>, vector<8x32xf32>
      tpu.vector_store %arg5[%c0_20, %c0_21], %38 {strides = array<i32>} : memref<8x32xf32, #tpu.memory_space<vmem>>, vector<8x32xf32>,
    } else {
    }
    %c0_i32_8 = arith.constant 0 : i32
    %22 = arith.cmpi eq, %arg0, %c0_i32_8 : i32
    %c2_i32 = arith.constant 2 : i32
    %23 = arith.cmpi eq, %arg1, %c2_i32 : i32
    %24 = arith.andi %22, %23 : i1
    %25 = arith.extui %24 : i1 to i32
    %c0_i32_9 = arith.constant 0 : i32
    %cst_10 = arith.constant 5.000000e-02 : f32
    %c0_i32_11 = arith.constant 0 : i32
    %26 = arith.cmpi ne, %25, %c0_i32_11 : i32
    scf.if %26 {
      %35 = tpu.memref_slice %arg8[%c0_i32_9] : memref<1x!tpu.dma_semaphore, #tpu.memory_space<semaphore_mem>> -> memref<1x!tpu.dma_semaphore, #tpu.memory_space<semaphore_mem>>
      %36 = tpu.memref_squeeze %35 : memref<1x!tpu.dma_semaphore, #tpu.memory_space<semaphore_mem>> -> memref<!tpu.dma_semaphore, #tpu.memory_space<semaphore_mem>>
      tpu.wait_dma2 semaphore(%36 : memref<!tpu.dma_semaphore, #tpu.memory_space<semaphore_mem>>) src(%arg3 : memref<32x32xf32, #tpu.memory_space<any>>) dst(%arg7 : memref<32x32xf32, #tpu.memory_space<vmem>>)
      %c0_17 = arith.constant 0 : index
      %c0_18 = arith.constant 0 : index
      %37 = vector.load %arg5[%c0_17, %c0_18] : memref<8x32xf32, #tpu.memory_space<vmem>>, vector<8x32xf32>
      %cst_19 = arith.constant dense<0.000000e+00> : vector<32xf32>
      %38 = vector.multi_reduction <add>, %37, %cst_19 [0] : vector<8x32xf32> to vector<32xf32>
      %39 = vector.shape_cast %38 : vector<32xf32> to vector<1x32xf32>
      %40 = vector.broadcast %cst_10 : f32 to vector<1x32xf32>
      %41 = arith.mulf %39, %40 : vector<1x32xf32>
      %c0_20 = arith.constant 0 : index
      %c0_21 = arith.constant 0 : index
      %42 = vector.load %arg7[%c0_20, %c0_21] : memref<32x32xf32, #tpu.memory_space<vmem>>, vector<32x32xf32>
      %cst_22 = arith.constant dense<0.000000e+00> : vector<1x32xf32>
      %43 = tpu.matmul %41, %42, %cst_22 {dimension_numbers = #tpu.dot_dimension_numbers<[1], [1], [0], [0], [0, 0, 1, 0], [], []>} : vector<1x32xf32>, vector<32x32xf32>, vector<1x32xf32> -> vector<1x32xf32>
      %cst_23 = arith.constant 0.000000e+00 : f32
      %44 = vector.broadcast %cst_23 : f32 to vector<1x32xf32>
      %45 = arith.maximumf %43, %44 : vector<1x32xf32>
      %c0_24 = arith.constant 0 : index
      %c0_25 = arith.constant 0 : index
      %46 = vector.load %arg6[%c0_24, %c0_25] : memref<1x32xf32, #tpu.memory_space<vmem>>, vector<1x32xf32>
      tpu.vector_store %arg6[%c0_24, %c0_25], %45 {strides = array<i32>} : memref<1x32xf32, #tpu.memory_space<vmem>>, vector<1x32xf32>,
    } else {
    }
    %c1_i32 = arith.constant 1 : i32
    %27 = arith.cmpi eq, %arg0, %c1_i32 : i32
    %28 = arith.extui %27 : i1 to i32
    %c0_i32_12 = arith.constant 0 : i32
    %29 = arith.cmpi ne, %28, %c0_i32_12 : i32
    scf.if %29 {
      %c0_17 = arith.constant 0 : index
      %c0_18 = arith.constant 0 : index
      %35 = vector.load %arg6[%c0_17, %c0_18] : memref<1x32xf32, #tpu.memory_space<vmem>>, vector<1x32xf32>
      %cst_19 = arith.constant dense<0.000000e+00> : vector<8x1xf32>
      %36 = tpu.matmul %18, %35, %cst_19 {dimension_numbers = #tpu.dot_dimension_numbers<[1], [1], [0], [0], [0, 0, 1, 0], [], []>} : vector<8x32xf32>, vector<1x32xf32>, vector<8x1xf32> -> vector<8x1xf32>
      %37 = arith.negf %36 : vector<8x1xf32>
      %38 = math.exp %37 : vector<8x1xf32>
      %cst_20 = arith.constant 1.000000e+00 : f32
      %39 = vector.broadcast %cst_20 : f32 to vector<8x1xf32>
      %40 = arith.addf %39, %38 : vector<8x1xf32>
      %41 = arith.divf %39, %40 : vector<8x1xf32>
      %c0_21 = arith.constant 0 : index
      %c0_22 = arith.constant 0 : index
      %42 = vector.load %arg5[%c0_21, %c0_22] : memref<8x32xf32, #tpu.memory_space<vmem>>, vector<8x32xf32>
      %43 = vector.broadcast %41 : vector<8x1xf32> to vector<8x32xf32>
      %44 = arith.mulf %18, %43 : vector<8x32xf32>
      %45 = vector.shape_cast %44 : vector<8x32xf32> to vector<1x8x32xf32>
      %cst_23 = arith.constant dense<0.000000e+00> : vector<8x32xf32>
      %46 = vector.multi_reduction <add>, %45, %cst_23 [0] : vector<1x8x32xf32> to vector<8x32xf32>
      %47 = arith.addf %42, %46 : vector<8x32xf32>
      %c0_24 = arith.constant 0 : index
      %c0_25 = arith.constant 0 : index
      %48 = vector.load %arg5[%c0_24, %c0_25] : memref<8x32xf32, #tpu.memory_space<vmem>>, vector<8x32xf32>
      tpu.vector_store %arg5[%c0_24, %c0_25], %47 {strides = array<i32>} : memref<8x32xf32, #tpu.memory_space<vmem>>, vector<8x32xf32>,
    } else {
    }
    %c1_i32_13 = arith.constant 1 : i32
    %30 = arith.cmpi eq, %arg0, %c1_i32_13 : i32
    %c2_i32_14 = arith.constant 2 : i32
    %31 = arith.cmpi eq, %arg1, %c2_i32_14 : i32
    %32 = arith.andi %30, %31 : i1
    %33 = arith.extui %32 : i1 to i32
    %cst_15 = arith.constant 5.000000e-02 : f32
    %c0_i32_16 = arith.constant 0 : i32
    %34 = arith.cmpi ne, %33, %c0_i32_16 : i32
    scf.if %34 {
      %c0_17 = arith.constant 0 : index
      %c0_18 = arith.constant 0 : index
      %35 = vector.load %arg5[%c0_17, %c0_18] : memref<8x32xf32, #tpu.memory_space<vmem>>, vector<8x32xf32>
      %cst_19 = arith.constant dense<0.000000e+00> : vector<32xf32>
      %36 = vector.multi_reduction <add>, %35, %cst_19 [0] : vector<8x32xf32> to vector<32xf32>
      %37 = vector.shape_cast %36 : vector<32xf32> to vector<1x32xf32>
      %38 = vector.broadcast %cst_15 : f32 to vector<1x32xf32>
      %39 = arith.mulf %37, %38 : vector<1x32xf32>
      %c0_20 = arith.constant 0 : index
      %c0_21 = arith.constant 0 : index
      %40 = vector.load %arg4[%c0_20, %c0_21] : memref<1x32xf32, #tpu.memory_space<vmem>>, vector<1x32xf32>
      tpu.vector_store %arg4[%c0_20, %c0_21], %39 {strides = array<i32>} : memref<1x32xf32, #tpu.memory_space<vmem>>, vector<1x32xf32>,
    } else {
    }
    return
  }
  func.func @transform_0(%arg0: i32, %arg1: i32) -> (i32, i32) {
    %c0_i32 = arith.constant 0 : i32
    %c0_i32_0 = arith.constant 0 : i32
    return %arg1, %c0_i32 : i32, i32
  }
  func.func @transform_2(%arg0: i32, %arg1: i32) -> (i32, i32) {
    %c0_i32 = arith.constant 0 : i32
    %c0_i32_0 = arith.constant 0 : i32
    %c0_i32_1 = arith.constant 0 : i32
    return %c0_i32, %c0_i32_0 : i32, i32
  }
}

</mosaic_0001>

<bundles_post_ra>
// kernel: tpu_custom_call.1
= control target key start
LH: loop header
LB: loop body
LE: loop exit
PB: predicated region body
PF: predicated region fallthrough
CT: control target
= control target key end

     0   :  { %7 = vsyncpa [#allocation7], 0  ;;  %s873_s0 = inlined_call_operand.hbm [shape: f32[20,32], index: 0, kind: input, shape index: {}]   ;;  %s874_s1 = inlined_call_operand.hbm [shape: f32[32,32], index: 1, kind: input, shape index: {}]   ;;  %s875_s2 = inlined_call_operand.hbm [shape: f32[1,32], index: 2, kind: output, shape index: {}]  }
   0x1   :  { %9 = vsyncpa [#allocation7 + $0x1], 0 }
   0x2   :  { %10 = vsyncpa [#allocation8], 0  ;;  %s701_s9 = smov 0   ;;  %s703_s10 = smov 0  }
   0x3   :  { %s705_s11 = smov 0   ;;  %s707_s12 = smov 0  }
   0x4   :  { %s709_s13 = smov 0   ;;  %s711_s14 = smov 0  }
   0x5   :  { %s713_s15 = smov 0   ;;  %s715_s16 = smov 0  }
   0x6 LB: > { %s401_s17 = sadd.s32 4294967295, %s678_s16   ;;  %s25_s18 = sadd.s32 1, %s670_s14  ;;  %s678_s16 = sphi %s715_s16, %s16_s16   ;;  %s674_s15 = sphi %s713_s15, %s887_s15   ;;  %s670_s14 = sphi %s711_s14, %s886_s14   ;;  %s666_s13 = sphi %s709_s13, %s885_s13   ;;  %s662_s12 = sphi %s707_s12, %s884_s12   ;;  %s658_s11 = sphi %s705_s11, %s883_s11   ;;  %s654_s10 = sphi %s703_s10, %s882_s10   ;;  %s650_s9 = sphi %s701_s9, %s881_s9  }
   0x7   : > { %p26_p0 = scmp.ge.s32.totalorder %s25_s18, 3  ;;  %s28_s19 = sadd.s32 1, %s674_s15 }
   0x8   : > { %s35_s20 = sadd.s32 1, %s658_s11  ;;  %p42_p1 = scmp.ne.s32.totalorder %s658_s11, %s654_s10 }
   0x9   : > { %s889_s18 = smov (%p26_p0, %s25_s18), 0  ;;  %s891_s19 = smov (!%p26_p0, %s28_s19), %s674_s15 }
   0xa   : > { %s32_s21 = ssub.s32 %s670_s14, %s889_s18  ;;  %p43_p2 = scmp.eq.s32.totalorder %s678_s16, 0 }
   0xb   : > { %p30_p3 = scmp.ge.s32.totalorder %s891_s19, 2  ;;  %p33_p4 = scmp.eq.s32.totalorder %s32_s21, 0 }
   0xc   : > { %p751_p5 = por %p43_p2, %p42_p1  ;;  %p48_p6 = scmp.ne.s32.totalorder %s654_s10, %s650_s9 }
   0xd   : > { %s893_s19 = smov (%p30_p3, %s891_s19), 0  ;;  %p49_p7 = scmp.eq.s32.totalorder %s401_s17, 0 }
   0xe   : > { %s759_s23 = scalar_select %p33_p4, %s658_s11, %s35_s20  }
   0xf   : > { %p452_p8 = scmp.lt.s32.totalorder %s678_s16, 6  ;;  %s93_s24 = sand.u32 1, %s658_s11  }
  0x10   : > { %p765_p9 = por %p49_p7, %p48_p6  ;;  %s404_s26 = sshll.u32 %s93_s24, 3 }
  0x11   : > { %s405_s27 = sshll.u32 %s670_s14, 7  ;;  %s97_s3 = scalar_lea.vmem [#allocation6], %s404_s26 }
  0x12   : > { %s102_s30 = scalar_lea.hbm %s873_s0, %s405_s27  ;;  %s104_s4 = sshll.u32 %s97_s3, 4  ;;  %s105_s4 = int_to_ptr.vmem [resolvable:$true] %s104_s4 }
  0x13   : > { %p775_p10 = pnand %p452_p8, %p751_p5  ;;  %p406_p11 = scmp.ge.s32.totalorder %s678_s16, 1 }
  0x14   : > { %p109_p12 = scmp.lt.s32.totalorder %s678_s16, 7  ;;  %s94_s6 = scalar_lea.sflag [#allocation7], %s93_s24 }
  0x15   : > { %p530_p13 = pneg %p775_p10  ;;  %s541_s7 = scalar_lea.vmem %s105_s4, 128 }
  0x16   : > { %p542_p0 = scmp.ne.s32.totalorder %s105_s4, %s541_s7  ;;  %s680_s8 = smov [#allocation6]  }
  0x17   : > { %s546_s9 = sshll.u32 %s680_s8, 4  ;;  %s547_s9 = int_to_ptr.vmem [resolvable:$false] %s546_s9 }
  0x18   : > { %p544_p1 = pnand %p542_p0, %p530_p13  ;;  %s548_s20 = scalar_lea.vmem %s547_s9, 256 }
  0x19   : > { %p549_p3 = scmp.lt.s32.totalorder %s105_s4, %s547_s9  ;;  %p550_p4 = scmp.lt.s32.totalorder %s548_s20, %s541_s7 }
  0x1a   : > { %p545_p2 = pneg %p544_p1 }
  0x1b   : > { %p551_p5 = por %p550_p4, %p549_p3 }
  0x1d   : > { %p552_p6 = pnand %p551_p5, %p545_p2 }
  0x1f   : > { %555 = shalt.err (!%p552_p6)
}
  0x20   : > { %451 = dma.hbm_to_vmem [thread:$0]  (!%p775_p10), %s102_s30, 128, %s105_s4, %s94_s6  }
  0x21   : > { %p110_p7 = pnand %p406_p11, %p109_p12 }
  0x22   : > { %s115_s21 = sand.u32 (!%p110_p7), 1, %s654_s10  }
  0x23   : > { %113 = sbr.rel (%p110_p7) target bundleno = 524 (0x20c), region = 24  ;;  %s790_s22 = sshll.u32 (!%p110_p7), %s115_s21, 3 }
  0x24   : > { %s116_s24 = scalar_lea.sflag (!%p110_p7), [#allocation7], %s115_s21  ;;  %s119_s26 = scalar_lea.vmem (!%p110_p7), [#allocation6], %s790_s22 }
  0x28   : > { %639 = dma.done.wait (%p765_p9), %s116_s24, 128  }
  0x29   : > { %641 = vsyncadd (%p765_p9), %s116_s24, 4294967168  ;;  %p133_p8 = scmp.eq.s32.totalorder %s666_s13, 0  ;;  %p134_p10 = scmp.eq.s32.totalorder %s662_s12, 0 }
  0x2a   : > { %s681_s28 = smov [#allocation4]  }
  0x2b   : > { %p801_p11 = pnand %p134_p10, %p133_p8  ;;  %s146_s29 = sshll.u32 %s681_s28, 4  ;;  %s147_s29 = int_to_ptr.vmem [resolvable:$true] %s146_s29 }
  0x2c   : > { %s567_s30 = scalar_lea.vmem %s147_s29, 512  ;;  %p575_p1 = scmp.lt.s32.totalorder %s147_s29, %s147_s29 }
  0x2d   : > { %p558_p12 = pneg %p801_p11  ;;  %p568_p13 = scmp.ne.s32.totalorder %s147_s29, %s567_s30 }
  0x2e   : > { %p576_p2 = scmp.lt.s32.totalorder %s567_s30, %s567_s30 }
  0x2f   : > { %p570_p0 = pnand %p568_p13, %p558_p12 }
  0x30   : > { %p577_p3 = por %p576_p2, %p575_p1 }
  0x31   : > { %p571_p9 = pneg %p570_p0 }
  0x33   : > { %p578_p4 = pnand %p577_p3, %p571_p9 }
  0x35   : > { %581 = shalt.err (!%p578_p4)  }
  0x36   : > { %443 = dma.hbm_to_vmem [thread:$0]  (!%p801_p11), %s874_s1, 512, %s147_s29, [#allocation5] }
  0x37   : > { %p408_p5 = scmp.ne.s32.totalorder %s662_s12, 0 }
  0x39   : > { %152 = sbr.rel (%p408_p5) target bundleno = 64 (0x40), region = 40 }
  0x3e   : > { %vm153_vm0 = vcmask 261120   ;;  %v682_v0 = vmov 0.0  }
  0x3f   : > { %154 = vst.msk [vmem:[#allocation2] sm:$0xff] %vm153_vm0, %v682_v0 }
  0x40 PF: > { %v156_v1 = vlaneseq  ;;  %s409_s4 = sshll.u32 %s662_s12, 3  ;;  %v155_v4 = vld [vmem:[%s119_s26] sm:$0xff]  ;;  %p410_p6 = scmp.ne.s32.totalorder %s666_s13, 0 }
  0x41   : > { %v159_v2 = vstv %s409_s4 }
  0x42   : > { %v157_v3 = vshrl.u32 %v156_v1, 7 }
  0x43   : > { %167 = sbr.rel (%p410_p6) target bundleno = 76 (0x4c), region = 44 }
  0x44   : > { %v160_v5 = vadd.s32 %v159_v2, %v157_v3 }
  0x46   : > { %vm161_vm1 = vcmp.lt.s32.totalorder %v160_v5, 20 }
  0x47   : > { %v164_v6 = vsel %vm161_vm1, %v155_v4, 0.0 }
  0x48   : > { %v168_v7 = vld [vmem:[#allocation2] sm:$0xff]  ;;  %vm171_vm2 = vcmask 261120  }
  0x49   : > { %v170_v8 = vadd.f32 %v168_v7, %v164_v6 }
  0x4b   : > { %172 = vst.msk [vmem:[#allocation2] sm:$0xff] %vm171_vm2, %v170_v8 }
  0x4c PF: > { %p173_p7 = scmp.eq.s32.totalorder %s662_s12, 2 }
  0x4e   : > { %p174_p10 = pnand %p173_p7, %p133_p8 }
  0x50   : > { %177 = sbr.rel (%p174_p10) target bundleno = 299 (0x12b), region = 48 }
  0x55   : > { %642 = dma.done.wait [#allocation5], 512 }
  0x56   : > { %643 = vsyncadd [#allocation5], 4294966784  ;;  %v683_v9 = vmov 0.0   ;;  %vm684_vm3 = vmmov 0   ;;  %vm182_vm4 = vcmask 261120   ;;  %v194_v10 = vld [vmem:[#allocation4 + $0x18] sm:$0xff] }
  0x57   : > { %429 = vmatprep.subr.mxu0 %v683_v9  ;;  %437 = vmatprep.mubr.msk.f32.mxu0 %vm684_vm3, %v683_v9  ;;  %v181_v11 = vld [vmem:[#allocation2] sm:$0xff]  ;;  %v192_v16 = vld [vmem:[#allocation4 + $0x8] sm:$0xff]  ;;  %v191_v19 = vld [vmem:[#allocation4] sm:$0xff]  ;;  %vm281_vm5 = vcmask 253952  }
  0x58   : > { %430 = vmatpush3.xpose.msk.msra.mxu0 %vm182_vm4, %v194_v10  ;;  %v193_v12 = vld [vmem:[#allocation4 + $0x10] sm:$0xff]  ;;  %v183_v13 = vsel %vm182_vm4, %v181_v11, 0.0 }
  0x59   : > { %431 = vmatprep.subr.mxu0 %v683_v9  ;;  %v184_v14 = vrot.slane %v183_v13, 4 }
  0x5b   : > { %v185_v15 = vadd.f32 %v184_v14, %v183_v13 }
  0x5c   : > { %432 = vmatpush3.xpose.msk.msra.mxu0 %vm182_vm4, %v193_v12 }
  0x5d   : > { %433 = vmatprep.subr.mxu0 %v683_v9  ;;  %v186_v17 = vrot.slane %v185_v15, 2 }
  0x5f   : > { %v187_v18 = vadd.f32 %v186_v17, %v185_v15 }
  0x60   : > { %434 = vmatpush3.xpose.msk.msra.mxu0 %vm182_vm4, %v192_v16 }
  0x61   : > { %435 = vmatprep.subr.mxu0 %v683_v9  ;;  %v188_v20 = vrot.slane %v187_v18, 1 }
  0x63   : > { %v189_v21 = vadd.f32 %v188_v20, %v187_v18 }
  0x64   : > { %436 = vmatpush3.xpose.msk.msra.mxu0 %vm182_vm4, %v191_v19 }
  0x65   : > { %v190_v22 = vmul.f32 0.05, %v189_v21 }
  0x67   : > { %438 = vmatmul.mubr.msk.f32.vlgmr.msra.gmra.mxu0 %vm182_vm4, %v190_v22 }
 0x127   : > { %v276_v23 = vpop.f32.mrf.mxu0 }
 0x128   : > { %v280_v24 = vmax.f32 %v276_v23, 0.0 }
 0x129   : > { %v439_v25 = vpop.f32.mrf.mxu0 }
 0x12a   : > { %282 = vst.msk [vmem:[#allocation3] sm:$0x1] %vm281_vm5, %v280_v24 }
 0x12b PF: > { %p283_p8 = scmp.eq.s32.totalorder %s666_s13, 1  ;;  %p416_p11 = scmp.ne.s32.totalorder %s666_s13, 1 }
 0x12d   : > { %286 = sbr.rel (%p416_p11) target bundleno = 485 (0x1e5), region = 52 }
 0x132   : > { %v417_v26 = vld [vmem:[#allocation3] ss:$0 sm:$0xff]  ;;  %vm295_vm6 = vcmask 261120   ;;  %v305_v34 = vld [vmem:[#allocation2] sm:$0xff] }
 0x133   : > { %v294_v27 = vmul.f32 %v417_v26, %v164_v6 }
 0x135   : > { %v296_v28 = vsel %vm295_vm6, %v294_v27, 0.0 }
 0x136   : > { %297 = vadd.xlane.f32.xlu0 %v296_v28 }
 0x1bf   : > { %v298_v29 = vpop.xlane.xlu0 %297 }
 0x1c0   : > { %v418_v30 = vmul.f32 -1.442695, %v298_v29 }
 0x1c2   : > { %524 = vpow2.f32 %v418_v30 }
 0x1cf   : > { %v525_v31 = vpop.eup %524 }
 0x1d0   : > { %v302_v32 = vadd.f32 1.0, %v525_v31 }
 0x1d2   : > { %526 = vrcp.f32 %v302_v32 }
 0x1df   : > { %v527_v33 = vpop.eup %526 }
 0x1e0   : > { %v306_v35 = vmul.f32 %v527_v33, %v164_v6 }
 0x1e2   : > { %v308_v36 = vadd.f32 %v306_v35, %v305_v34 }
 0x1e4   : > { %309 = vst.msk [vmem:[#allocation2] sm:$0xff] %vm295_vm6, %v308_v36 }
 0x1e5 PF: > { %p310_p12 = pnand %p283_p8, %p173_p7 }
 0x1e7   : > { %313 = sbr.rel (%p310_p12) target bundleno = 509 (0x1fd), region = 56 }
 0x1ec   : > { %v314_v37 = vld [vmem:[#allocation2] sm:$0xff]  ;;  %vm315_vm7 = vcmask 261120   ;;  %vm324_vm8 = vcmask 253952  }
 0x1ed   : > { %v316_v38 = vsel %vm315_vm7, %v314_v37, 0.0 }
 0x1ee   : > { %v317_v39 = vrot.slane %v316_v38, 4 }
 0x1f0   : > { %v318_v40 = vadd.f32 %v317_v39, %v316_v38 }
 0x1f2   : > { %v319_v41 = vrot.slane %v318_v40, 2 }
 0x1f4   : > { %v320_v42 = vadd.f32 %v319_v41, %v318_v40 }
 0x1f6   : > { %v321_v43 = vrot.slane %v320_v42, 1 }
 0x1f8   : > { %v322_v44 = vadd.f32 %v321_v43, %v320_v42 }
 0x1fa   : > { %v323_v45 = vmul.f32 0.05, %v322_v44 }
 0x1fc   : > { %325 = vst.msk [vmem:[#allocation9] sm:$0x1] %vm324_vm8, %v323_v45 }
 0x1fd PF: > { %p834_p13 = scmp.eq.s32.totalorder %s401_s17, 5  ;;  %s685_s13 = smov [#allocation9]  }
 0x1fe   : > { %s333_s5 = sshll.u32 %s685_s13, 4  ;;  %s334_s5 = int_to_ptr.vmem [resolvable:$true] %s333_s5 }
 0x1ff   : > { %s582_s6 = scalar_lea.vmem %s334_s5, 16  ;;  %s588_s7 = scalar_lea.vmem %s334_s5, 32 }
 0x200   : > { %p583_p0 = scmp.ne.s32.totalorder %s334_s5, %s582_s6  ;;  %p589_p2 = scmp.lt.s32.totalorder %s334_s5, %s334_s5 }
 0x201   : > { %p590_p3 = scmp.lt.s32.totalorder %s588_s7, %s582_s6 }
 0x202   : > { %p584_p9 = pnand %p583_p0, %p834_p13 }
 0x203   : > { %p591_p4 = por %p590_p3, %p589_p2 }
 0x204   : > { %p585_p1 = pneg %p584_p9 }
 0x206   : > { %p592_p5 = pnand %p591_p4, %p585_p1 }
 0x208   : > { %595 = shalt.err (!%p592_p5)
}
 0x209   : > { %445 = dma.vmem_to_hbm [thread:$0]  (%p834_p13), %s334_s5, 16, %s875_s2, [#allocation8]  }
 0x20a   : > { %645 = dma.done.wait (%p834_p13), [#allocation8], 16  }
 0x20b   : > { %647 = vsyncadd (%p834_p13), [#allocation8], 4294967280 }
 0x20c PF: > { %s16_s16 = sadd.s32 1, %s678_s16   ;;  %s881_s9 = smov %s654_s10 }
 0x20d   : > { %p13_p6 = scmp.ge.s32.totalorder %s16_s16, 8   ;;  %s882_s10 = smov %s658_s11 }
 0x20e   : > { %s883_s11 = smov %s759_s23  ;;  %s884_s12 = smov %s670_s14 }
 0x20f   : > { %s885_s13 = smov %s674_s15  ;;  %s886_s14 = smov %s889_s18 }
 0x210   : > { %s887_s15 = smov %s893_s19  ;;  %15 = sbr.rel (!%p13_p6) target bundleno = 6 (0x6), region = 89 }
 0x215   :  { %346 = vsyncpa [#allocation7], 1 }
 0x216   :  { %348 = vsyncpa [#allocation7 + $0x1], 1 }
 0x217   :  { %349 = vsyncpa [#allocation8], 1 }
 0x218   :  { %351 = vsyncpa [#allocation8 + $0x1], 1 }
 0x219   :  { %352 = vsyncmov [#allocation5] }
 0x21c   :  { %s353_s20 = vpop.sfrf %352 }
 0x21d   :  { %p423_p7 = scmp.ne.s32.totalorder %s353_s20, 0 }
 0x21f   :  { %357 = shalt.err (%p423_p7)  }

</bundles_post_ra>
